<compile_context>
chip_gen: v7x
topology: tpu7x:2x2x1
jax: 0.10.0
libtpu: 0.0.40
codegen_flags: <defaults>
</compile_context>

<pallas_src>
import jax
import jax.numpy as jnp
import numpy as np
from jax.experimental import pallas as pl
from jax.experimental.pallas import tpu as pltpu


def _round_up(x: int, m: int) -> int:
    return ((x + m - 1) // m) * m


def _coulomb_kernel(gidx_ref, sidx_ref, w_ref, charges_ref, pot_ref):
    """One block of the fused symmetric Coulomb gather/scatter.

    gidx_ref    : (1, 1, TP) int32  charge-source atom per fused pair (-1 = pad)
    sidx_ref    : (1, 1, TP) int32  potential-target atom per fused pair (-1 = pad)
    w_ref       : (1, 1, TP) f32    prefactor / |r_ij| per fused pair (0 = pad)
    charges_ref : (A_pad, C) f32    per-atom charges (zero-padded rows), resident
    pot_ref     : (1, A_pad, C) f32 per-shard potential accumulator, resident
    """
    @pl.when(pl.program_id(1) == 0)
    def _init():
        pot_ref[...] = jnp.zeros_like(pot_ref)

    a_pad = charges_ref.shape[0]
    tp = gidx_ref.shape[-1]

    gidx = gidx_ref[0]   # (1, TP) int32, pairs lane-dense
    sidx = sidx_ref[0]   # (1, TP)
    w = w_ref[0]         # (1, TP) f32

    # One-hots over atoms in (A_pad, TP) orientation: atoms on sublanes (dim-0
    # iota), index row broadcast along sublanes.  Padded pairs carry index -1
    # -> all-zero column -> zero contribution (w is also 0 for them).
    atom_iota = jax.lax.broadcasted_iota(jnp.int32, (a_pad, tp), 0)
    # Weight folded directly into the gather one-hot (avoids a (TP,1) reshape).
    oh_gw = jnp.where(gidx == atom_iota, w, jnp.float32(0.0))    # (A_pad, TP)
    oh_s = (sidx == atom_iota).astype(jnp.float32)               # (A_pad, TP)

    # MXU gather: g_w[p, c] = w[p] * charges[gather_idx[p], c]
    # (dim0-dim0 contraction -> no materialized transpose).
    g_w = jax.lax.dot_general(
        oh_gw, charges_ref[...], (((0,), (0,)), ((), ())),
        preferred_element_type=jnp.float32)                      # (TP, C)

    # MXU scatter-add: contrib[a, c] = sum_p oh_s[a, p] * g_w[p, c]
    contrib = jax.lax.dot_general(
        oh_s, g_w, (((1,), (0,)), ((), ())),
        preferred_element_type=jnp.float32)                      # (A_pad, C)

    pot_ref[...] += contrib[None]


def calculator_forward(charges, neighbor_vecs, neighbor_indices, *,
                       prefactor=1.0, block_pairs=1024, num_shards=2):
    """charges: (A, C) f32, neighbor_vecs: (P, 3) f32, neighbor_indices: (P, 2) int.

    Returns the potential with shape (A, C), matching the torch module's block
    values (prefactor already applied).
    """
    charges = charges.astype(jnp.float32)
    neighbor_vecs = neighbor_vecs.astype(jnp.float32)

    n_atoms, n_channels = charges.shape
    n_pairs = neighbor_indices.shape[0]

    # 1/r via rsqrt, prefactor folded in; zero-length vectors guarded so
    # padding / degenerate pairs never inject inf/nan into the accumulator.
    d2 = jnp.sum(neighbor_vecs * neighbor_vecs, axis=-1)                       # (P,)
    w = jnp.where(d2 > 0.0, jnp.float32(prefactor) * jax.lax.rsqrt(d2), 0.0)   # (P,)

    idx = neighbor_indices.astype(jnp.int32)
    ii = idx[:, 0]
    jj = idx[:, 1]

    # Fuse the symmetric half-list contributions into ONE doubled pair stream:
    #   entry p       : pot[ii[p]] += charges[jj[p]] * w[p]
    #   entry p + P   : pot[jj[p]] += charges[ii[p]] * w[p]
    gather_idx = jnp.concatenate([jj, ii])      # charge source     (2P,)
    scatter_idx = jnp.concatenate([ii, jj])     # potential target  (2P,)
    w2 = jnp.concatenate([w, w])                # (2P,)

    n_eff = 2 * n_pairs
    tp = max(int(block_pairs), 1)
    num_shards = max(int(num_shards), 1)
    bps = max(-(-max(n_eff, 1) // (num_shards * tp)), 1)   # blocks per shard
    e_pad = num_shards * bps * tp
    total_blocks = num_shards * bps

    # Atoms live on sublanes of the one-hots -> pad to a multiple of 8.
    a_pad = _round_up(max(n_atoms, 1), 8)

    pad_e = e_pad - n_eff
    gidx_p = jnp.pad(gather_idx, (0, pad_e), constant_values=-1).reshape(
        total_blocks, 1, tp)
    sidx_p = jnp.pad(scatter_idx, (0, pad_e), constant_values=-1).reshape(
        total_blocks, 1, tp)
    w_p = jnp.pad(w2, (0, pad_e)).reshape(total_blocks, 1, tp)
    charges_p = jnp.pad(charges, ((0, a_pad - n_atoms), (0, 0)))

    grid = (num_shards, bps)

    flops = 4 * e_pad * a_pad * n_channels   # 2 MXU contractions, 2 flops/MAC
    bytes_accessed = 4 * (3 * e_pad + a_pad * n_channels * (1 + num_shards))

    def stream_spec():
        return pl.BlockSpec((1, 1, tp), lambda s, k: (s * bps + k, 0, 0))

    # TODO(synk): for very large atom counts the (A_pad, TP) one-hots need an
    # additional atom-tile grid axis; budget the tiles against v7x's 32 MiB
    # scoped / 64 MiB physical VMEM (not v5e/v6e's 128 MiB).
    pot_sh = pl.pallas_call(
        _coulomb_kernel,
        out_shape=jax.ShapeDtypeStruct((num_shards, a_pad, n_channels),
                                       jnp.float32),
        grid_spec=pltpu.PrefetchScalarGridSpec(
            num_scalar_prefetch=0,
            grid=grid,
            in_specs=[
                stream_spec(),                                            # gather idx
                stream_spec(),                                            # scatter idx
                stream_spec(),                                            # w = prefactor/r
                pl.BlockSpec((a_pad, n_channels), lambda s, k: (0, 0)),   # charges (resident)
            ],
            out_specs=pl.BlockSpec((1, a_pad, n_channels),
                                   lambda s, k: (s, 0, 0)),
        ),
        compiler_params=pltpu.CompilerParams(
            dimension_semantics=("parallel", "arbitrary"),   # shards || , pair-block reduction
            vmem_limit_bytes=32 * 1024 * 1024,
        ),
        cost_estimate=pl.CostEstimate(
            flops=flops, transcendentals=0, bytes_accessed=bytes_accessed),
    )(gidx_p, sidx_p, w_p, charges_p)

    # Combine per-shard partial potentials and drop atom padding.
    return pot_sh.sum(axis=0)[:n_atoms, :]


def _reference(charges, neighbor_vecs, neighbor_indices):
    # Pure-JAX reference mirroring torchpme.calculators.Calculator._compute_rspace
    w = 1.0 / jnp.linalg.norm(neighbor_vecs, axis=1)
    ii = neighbor_indices[:, 0]
    jj = neighbor_indices[:, 1]
    pot = jnp.zeros_like(charges)
    pot = pot.at[ii].add(charges[jj] * w[:, None])
    pot = pot.at[jj].add(charges[ii] * w[:, None])
    return pot


if __name__ == "__main__":
    key = jax.random.PRNGKey(0)
    n_atoms, n_channels, n_pairs = 8, 4, 16

    k_pos, k_chg, k_pair = jax.random.split(key, 3)
    positions = jax.random.normal(k_pos, (n_atoms, 3), dtype=jnp.float32) * 2.0
    charges = jax.random.normal(k_chg, (n_atoms, n_channels), dtype=jnp.float32)

    # Half neighbor list (first_atom < second_atom), deterministic pairs.
    all_pairs = np.array(
        [(i, j) for i in range(n_atoms) for j in range(i + 1, n_atoms)],
        dtype=np.int32)
    sel = np.asarray(jax.random.permutation(k_pair, all_pairs.shape[0]))[:n_pairs]
    neighbor_indices = jnp.asarray(all_pairs[np.sort(sel)])            # (P, 2) i32

    # metatensor stores neighbors.values as (P, 3, 1); we use the squeezed (P, 3)
    neighbor_vecs = positions[neighbor_indices[:, 1]] - positions[neighbor_indices[:, 0]]

    ref = _reference(charges, neighbor_vecs, neighbor_indices)

    # Production configuration: large fused-pair block, 2-way shard axis.
    out = calculator_forward(charges, neighbor_vecs, neighbor_indices)
    out = jax.block_until_ready(out)
    np.testing.assert_allclose(np.asarray(out), np.asarray(ref), rtol=1e-5, atol=1e-5)

    # Tiny block purely to exercise the multi-step resident-accumulator path.
    out_small = calculator_forward(charges, neighbor_vecs, neighbor_indices,
                                   block_pairs=8, num_shards=2)
    out_small = jax.block_until_ready(out_small)
    np.testing.assert_allclose(np.asarray(out_small), np.asarray(ref),
                               rtol=1e-5, atol=1e-5)

    # TODO(synk): metatensor TensorMap / Labels / System metadata validation and
    # wrapping have no Pallas equivalent; only the numeric potential block
    # values are produced here.
    print("KERNEL_OK")
</pallas_src>

<mosaic_0001>
module attributes {stable_mosaic.version = 11 : i64} {
  func.func @_coulomb_kernel(%arg0: i32, %arg1: i32, %arg2: memref<1x1x1024xi32, #tpu.memory_space<vmem>>, %arg3: memref<1x1x1024xi32, #tpu.memory_space<vmem>>, %arg4: memref<1x1x1024xf32, #tpu.memory_space<vmem>>, %arg5: memref<8x4xf32, #tpu.memory_space<vmem>>, %arg6: memref<1x8x4xf32, #tpu.memory_space<vmem>>) attributes {dimension_semantics = [#tpu.dimension_semantics<parallel>, #tpu.dimension_semantics<arbitrary>], iteration_bounds = array<i64: 2, 1>, scalar_prefetch = 0 : i64, scratch_operands = 0 : i64, tpu.core_type = #tpu.core_type<tc>, window_params = [{transform_indices = @transform_0, window_bounds = array<i64: 1, 1, 1024>}, {transform_indices = @transform_1, window_bounds = array<i64: 1, 1, 1024>}, {transform_indices = @transform_2, window_bounds = array<i64: 1, 1, 1024>}, {pipeline_mode = #tpu.pipeline_mode<synchronous>, transform_indices = @transform_3, window_bounds = array<i64: 8, 4>}, {transform_indices = @transform_4, window_bounds = array<i64: 1, 8, 4>}]} {
    %c0_i32 = arith.constant 0 : i32
    %0 = arith.cmpi eq, %arg1, %c0_i32 : i32
    %1 = arith.extui %0 : i1 to i32
    %c0_i32_0 = arith.constant 0 : i32
    %2 = arith.cmpi ne, %1, %c0_i32_0 : i32
    scf.if %2 {
      %cst_19 = arith.constant 0.000000e+00 : f32
      %27 = vector.broadcast %cst_19 : f32 to vector<1x8x4xf32>
      %c0_20 = arith.constant 0 : index
      %c0_21 = arith.constant 0 : index
      %c0_22 = arith.constant 0 : index
      %28 = vector.load %arg6[%c0_20, %c0_21, %c0_22] : memref<1x8x4xf32, #tpu.memory_space<vmem>>, vector<1x8x4xf32>
      tpu.vector_store %arg6[%c0_20, %c0_21, %c0_22], %27 {strides = array<i32>} : memref<1x8x4xf32, #tpu.memory_space<vmem>>, vector<1x8x4xf32>,
    } else {
    }
    %c0 = arith.constant 0 : index
    %c0_1 = arith.constant 0 : index
    %c0_2 = arith.constant 0 : index
    %3 = vector.load %arg2[%c0, %c0_1, %c0_2] : memref<1x1x1024xi32, #tpu.memory_space<vmem>>, vector<1x1x1024xi32>
    %4 = vector.shape_cast %3 : vector<1x1x1024xi32> to vector<1x1024xi32>
    %c0_3 = arith.constant 0 : index
    %c0_4 = arith.constant 0 : index
    %c0_5 = arith.constant 0 : index
    %5 = vector.load %arg3[%c0_3, %c0_4, %c0_5] : memref<1x1x1024xi32, #tpu.memory_space<vmem>>, vector<1x1x1024xi32>
    %6 = vector.shape_cast %5 : vector<1x1x1024xi32> to vector<1x1024xi32>
    %c0_6 = arith.constant 0 : index
    %c0_7 = arith.constant 0 : index
    %c0_8 = arith.constant 0 : index
    %7 = vector.load %arg4[%c0_6, %c0_7, %c0_8] : memref<1x1x1024xf32, #tpu.memory_space<vmem>>, vector<1x1x1024xf32>
    %8 = vector.shape_cast %7 : vector<1x1x1024xf32> to vector<1x1024xf32>
    %9 = tpu.iota {dimensions = array<i32: 0>} : vector<8x1024xi32>
    %10 = vector.broadcast %4 : vector<1x1024xi32> to vector<8x1024xi32>
    %11 = arith.cmpi eq, %10, %9 : vector<8x1024xi32>
    %cst = arith.constant 0.000000e+00 : f32
    %12 = vector.shape_cast %8 : vector<1x1024xf32> to vector<1x1024xf32>
    %13 = vector.broadcast %12 : vector<1x1024xf32> to vector<8x1024xf32>
    %14 = vector.broadcast %cst : f32 to vector<8x1024xf32>
    %15 = arith.select %11, %13, %14 : vector<8x1024xi1>, vector<8x1024xf32>
    %16 = vector.broadcast %6 : vector<1x1024xi32> to vector<8x1024xi32>
    %17 = arith.cmpi eq, %16, %9 : vector<8x1024xi32>
    %18 = arith.extui %17 : vector<8x1024xi1> to vector<8x1024xi32>
    %19 = arith.sitofp %18 : vector<8x1024xi32> to vector<8x1024xf32>
    %c0_9 = arith.constant 0 : index
    %c0_10 = arith.constant 0 : index
    %20 = vector.load %arg5[%c0_9, %c0_10] : memref<8x4xf32, #tpu.memory_space<vmem>>, vector<8x4xf32>
    %cst_11 = arith.constant dense<0.000000e+00> : vector<1024x4xf32>
    %21 = tpu.matmul %15, %20, %cst_11 {dimension_numbers = #tpu.dot_dimension_numbers<[0], [0], [1], [1], [0, 1, 1, 1], [], []>} : vector<8x1024xf32>, vector<8x4xf32>, vector<1024x4xf32> -> vector<1024x4xf32>
    %cst_12 = arith.constant dense<0.000000e+00> : vector<8x4xf32>
    %22 = tpu.matmul %19, %21, %cst_12 {dimension_numbers = #tpu.dot_dimension_numbers<[1], [0], [0], [1], [0, 0, 1, 1], [], []>} : vector<8x1024xf32>, vector<1024x4xf32>, vector<8x4xf32> -> vector<8x4xf32>
    %c0_13 = arith.constant 0 : index
    %c0_14 = arith.constant 0 : index
    %c0_15 = arith.constant 0 : index
    %23 = vector.load %arg6[%c0_13, %c0_14, %c0_15] : memref<1x8x4xf32, #tpu.memory_space<vmem>>, vector<1x8x4xf32>
    %24 = vector.shape_cast %22 : vector<8x4xf32> to vector<1x8x4xf32>
    %25 = arith.addf %23, %24 : vector<1x8x4xf32>
    %c0_16 = arith.constant 0 : index
    %c0_17 = arith.constant 0 : index
    %c0_18 = arith.constant 0 : index
    %26 = vector.load %arg6[%c0_16, %c0_17, %c0_18] : memref<1x8x4xf32, #tpu.memory_space<vmem>>, vector<1x8x4xf32>
    tpu.vector_store %arg6[%c0_16, %c0_17, %c0_18], %25 {strides = array<i32>} : memref<1x8x4xf32, #tpu.memory_space<vmem>>, vector<1x8x4xf32>,
    return
  }
  func.func @transform_0(%arg0: i32, %arg1: i32) -> (i32, i32, i32) {
    %c1_i32 = arith.constant 1 : i32
    %0 = arith.muli %arg0, %c1_i32 : i32
    %1 = arith.addi %0, %arg1 : i32
    %c0_i32 = arith.constant 0 : i32
    %c0_i32_0 = arith.constant 0 : i32
    %c0_i32_1 = arith.constant 0 : i32
    return %1, %c0_i32, %c0_i32_0 : i32, i32, i32
  }
  func.func @transform_1(%arg0: i32, %arg1: i32) -> (i32, i32, i32) {
    %c1_i32 = arith.constant 1 : i32
    %0 = arith.muli %arg0, %c1_i32 : i32
    %1 = arith.addi %0, %arg1 : i32
    %c0_i32 = arith.constant 0 : i32
    %c0_i32_0 = arith.constant 0 : i32
    %c0_i32_1 = arith.constant 0 : i32
    return %1, %c0_i32, %c0_i32_0 : i32, i32, i32
  }
  func.func @transform_2(%arg0: i32, %arg1: i32) -> (i32, i32, i32) {
    %c1_i32 = arith.constant 1 : i32
    %0 = arith.muli %arg0, %c1_i32 : i32
    %1 = arith.addi %0, %arg1 : i32
    %c0_i32 = arith.constant 0 : i32
    %c0_i32_0 = arith.constant 0 : i32
    %c0_i32_1 = arith.constant 0 : i32
    return %1, %c0_i32, %c0_i32_0 : i32, i32, i32
  }
  func.func @transform_3(%arg0: i32, %arg1: i32) -> (i32, i32) {
    %c0_i32 = arith.constant 0 : i32
    %c0_i32_0 = arith.constant 0 : i32
    %c0_i32_1 = arith.constant 0 : i32
    return %c0_i32, %c0_i32_0 : i32, i32
  }
  func.func @transform_4(%arg0: i32, %arg1: i32) -> (i32, i32, i32) {
    %c0_i32 = arith.constant 0 : i32
    %c0_i32_0 = arith.constant 0 : i32
    %c0_i32_1 = arith.constant 0 : i32
    return %arg0, %c0_i32, %c0_i32_0 : i32, i32, i32
  }
}

</mosaic_0001>

<bundles_post_ra>
// kernel: tpu_custom_call.1
= control target key start
LH: loop header
LB: loop body
LE: loop exit
PB: predicated region body
PF: predicated region fallthrough
CT: control target
= control target key end

     0   :  { %9 = vsyncpa [#allocation3], 0  ;;  %s3854_s0 = inlined_call_operand.hbm [shape: s32[2,1,1024], index: 0, kind: input, shape index: {}]   ;;  %s3855_s1 = inlined_call_operand.hbm [shape: s32[2,1,1024], index: 1, kind: input, shape index: {}]   ;;  %s3856_s2 = inlined_call_operand.vmem [shape: f32[2,1,1024], index: 2, kind: input, shape index: {}]   ;;  %s3857_s3 = inlined_call_operand.vmem [shape: f32[8,4], index: 3, kind: input, shape index: {}]   ;;  %s3858_s4 = inlined_call_operand.vmem [shape: f32[2,8,4], index: 4, kind: output, shape index: {}]  }
   0x1   :  { %11 = vsyncpa [#allocation3 + $0x1], 0 }
   0x2   :  { %12 = vsyncpa [#allocation5], 0 }
   0x3   :  { %14 = vsyncpa [#allocation5 + $0x1], 0  ;;  %s3156_s15 = smov 0   ;;  %s3158_s16 = smov 0  }
   0x4   :  { %s3160_s17 = smov 0   ;;  %s3162_s18 = smov 0  }
   0x5   :  { %s3164_s19 = smov 0   ;;  %s3166_s20 = smov 0  }
   0x6 LB: > { %s2193_s21 = sadd.s32 4294967295, %s3125_s20   ;;  %s32_s22 = sadd.s32 1, %s3121_s19  ;;  %s3125_s20 = sphi %s3166_s20, %s20_s20   ;;  %s3121_s19 = sphi %s3164_s19, %s3872_s19   ;;  %s3117_s18 = sphi %s3162_s18, %s3871_s18   ;;  %s3113_s17 = sphi %s3160_s17, %s3870_s17   ;;  %s3109_s16 = sphi %s3158_s16, %s3869_s16   ;;  %s3105_s15 = sphi %s3156_s15, %s3868_s15  }
   0x7   : > { %p34_p0 = scmp.ge.s32.totalorder %s32_s22, 2  ;;  %s41_s23 = sadd.s32 1, %s3113_s17 }
   0x8   : > { %p48_p1 = scmp.ne.s32.totalorder %s3113_s17, %s3109_s16  ;;  %p49_p2 = scmp.eq.s32.totalorder %s3125_s20, 0 }
   0x9   : > { %s3874_s22 = smov (%p34_p0, %s32_s22), 0  ;;  %p54_p4 = scmp.ne.s32.totalorder %s3109_s16, %s3105_s15 }
   0xa   : > { %p3192_p3 = por %p49_p2, %p48_p1  ;;  %s38_s25 = ssub.s32 %s3121_s19, %s3874_s22 }
   0xb   : > { %p55_p5 = scmp.eq.s32.totalorder %s2193_s21, 0  ;;  %p39_p6 = scmp.eq.s32.totalorder %s38_s25, 0 }
   0xc   : > { %p2960_p8 = scmp.lt.s32.totalorder %s3125_s20, 2  ;;  %s3208_s28 = sand.u32 1, %s3113_s17  }
   0xd   : > { %p3199_p7 = por %p55_p5, %p54_p4  ;;  %s2354_s29 = sshll.u32 %s3121_s19, 7 }
   0xe   : > { %s3205_s27 = scalar_select %p39_p6, %s3113_s17, %s41_s23  }
   0xf   : > { %s3861_s26 = scalar_select %p3199_p7, 1, 0 }
  0x10   : > { %s2197_s30 = sshll.u32 %s3208_s28, 3  ;;  %s3217_s7 = scalar_lea.hbm %s3854_s0, %s2354_s29 }
  0x11   : > { %s188_s8 = scalar_lea.vmem [#allocation2], %s2197_s30  ;;  %p3223_p9 = pnand %p2960_p8, %p3192_p3 }
  0x12   : > { %s197_s9 = sshll.u32 %s188_s8, 4  ;;  %s185_s11 = scalar_lea.sflag [#allocation3], %s3208_s28  ;;  %s3227_s9 = int_to_ptr.vmem [resolvable:$true] %s197_s9 }
  0x13   : > { %s3011_s12 = scalar_lea.hbm %s3217_s7, 128  ;;  %p3013_p13 = pneg %p3223_p9 }
  0x14   : > { %p3012_p12 = scmp.ne.s32.totalorder %s3217_s7, %s3011_s12  ;;  %s3016_s15 = scalar_lea.hbm %s3854_s0, 256 }
  0x15   : > { %p3017_p2 = scmp.lt.u32.totalorder %s3217_s7, %s3854_s0  ;;  %p3018_p3 = scmp.lt.u32.totalorder %s3016_s15, %s3011_s12 }
  0x16   : > { %p3014_p0 = pnand %p3013_p13, %p3012_p12  ;;  %p3020_p5 = scmp.lt.u32.totalorder %s3011_s12, %s3217_s7 }
  0x17   : > { %p3019_p4 = por %p3018_p3, %p3017_p2 }
  0x18   : > { %p3015_p1 = pneg %p3014_p0 }
  0x19   : > { %p3021_p6 = por %p3020_p5, %p3019_p4 }
  0x1b   : > { %p3022_p8 = pnand %p3021_p6, %p3015_p1 }
  0x1d   : > { %3025 = shalt.err (!%p3022_p8)
}
  0x1e   : > { %s3026_s24 = scalar_lea.vmem %s3227_s9, 128  ;;  %s3127_s25 = smov [#allocation2]  }
  0x1f   : > { %p3027_p12 = scmp.ne.s32.totalorder %s3227_s9, %s3026_s24  ;;  %s3031_s5 = sshll.u32 %s3127_s25, 4  ;;  %s3032_s5 = int_to_ptr.vmem [resolvable:$false] %s3031_s5 }
  0x20   : > { %s3033_s6 = scalar_lea.vmem %s3032_s5, 256  ;;  %p3034_p11 = scmp.lt.s32.totalorder %s3227_s9, %s3032_s5 }
  0x21   : > { %p3029_p0 = pnand %p3027_p12, %p3013_p13  ;;  %p3035_p2 = scmp.lt.s32.totalorder %s3033_s6, %s3026_s24 }
  0x23   : > { %p3030_p10 = pneg %p3029_p0  ;;  %p3036_p3 = por %p3035_p2, %p3034_p11 }
  0x25   : > { %p3037_p4 = pnand %p3036_p3, %p3030_p10 }
  0x27   : > { %3040 = shalt.err (!%p3037_p4)
}
  0x28   : > { %2956 = dma.hbm_to_vmem [thread:$0]  (!%p3223_p9), %s3217_s7, 128, %s3227_s9, %s185_s11  }
  0x29   : > { %p3863_p1 = scmp.lt.s32.totalorder %s3125_s20, 3  ;;  %p3864_p5 = scmp.ge.s32.totalorder %s3125_s20, 1 }
  0x2a   : > { %s3270_s14 = scalar_lea.hbm %s3855_s1, %s2354_s29  ;;  %s208_s15 = scalar_lea.vmem [#allocation4], %s2197_s30 }
  0x2b   : > { %p3261_p6 = pnand %p3864_p5, %p3863_p1  ;;  %s217_s21 = sshll.u32 %s208_s15, 4  ;;  %s218_s21 = int_to_ptr.vmem [resolvable:$true] %s217_s21 }
  0x2c   : > { %s205_s7 = scalar_lea.sflag [#allocation5], %s3208_s28  ;;  %s3041_s9 = scalar_lea.hbm %s3270_s14, 128 }
  0x2d   : > { %s3865_s8 = scalar_select %p3261_p6, 1, 0 }
  0x2e   : > { %p3042_p10 = scmp.ne.s32.totalorder %s3270_s14, %s3041_s9  ;;  %s3046_s29 = scalar_lea.hbm %s3855_s1, 256 }
  0x2f   : > { %p3047_p12 = scmp.lt.u32.totalorder %s3270_s14, %s3855_s1  ;;  %p3048_p0 = scmp.lt.u32.totalorder %s3046_s29, %s3041_s9 }
  0x30   : > { %p3044_p11 = pnand %p3042_p10, %p3013_p13  ;;  %p3050_p3 = scmp.lt.u32.totalorder %s3041_s9, %s3270_s14 }
  0x31   : > { %p3049_p2 = por %p3048_p0, %p3047_p12 }
  0x32   : > { %p3045_p8 = pneg %p3044_p11 }
  0x33   : > { %p3051_p4 = por %p3050_p3, %p3049_p2 }
  0x35   : > { %p3052_p1 = pnand %p3051_p4, %p3045_p8 }
  0x37   : > { %3055 = shalt.err (!%p3052_p1)
}
  0x38   : > { %s3056_s28 = scalar_lea.vmem %s218_s21, 128  ;;  %s3128_s30 = smov [#allocation4]  }
  0x39   : > { %p3057_p5 = scmp.ne.s32.totalorder %s218_s21, %s3056_s28  ;;  %s3061_s5 = sshll.u32 %s3128_s30, 4  ;;  %s3062_s5 = int_to_ptr.vmem [resolvable:$false] %s3061_s5 }
  0x3a   : > { %s3063_s6 = scalar_lea.vmem %s3062_s5, 256  ;;  %p3064_p7 = scmp.lt.s32.totalorder %s218_s21, %s3062_s5 }
  0x3b   : > { %p3059_p10 = pnand %p3057_p5, %p3013_p13  ;;  %p3065_p6 = scmp.lt.s32.totalorder %s3063_s6, %s3056_s28 }
  0x3d   : > { %p3060_p11 = pneg %p3059_p10  ;;  %p3066_p0 = por %p3065_p6, %p3064_p7 }
  0x3f   : > { %p3067_p12 = pnand %p3066_p0, %p3060_p11 }
  0x41   : > { %3070 = shalt.err (!%p3067_p12)
}
  0x42   : > { %2959 = dma.hbm_to_vmem [thread:$0]  (!%p3223_p9), %s3270_s14, 128, %s218_s21, %s205_s7  }
  0x43   : > { %p3866_p8 = scmp.ne.s32.totalorder %s3865_s8, 0 }
  0x44   : > { %s237_s12 = sand.u32 (!%p3866_p8), 1, %s3109_s16   ;;  %p3867_p13 = scmp.ne.s32.totalorder (!%p3866_p8), %s3861_s26, 0 }
  0x45   : > { %235 = sbr.rel (%p3866_p8) target bundleno = 941 (0x3ad), region = 36  ;;  %s2204_s13 = sshll.u32 (!%p3866_p8), %s237_s12, 3 }
  0x46   : > { %s238_s15 = scalar_lea.sflag (!%p3866_p8), [#allocation3], %s237_s12  ;;  %s241_s9 = scalar_lea.vmem (!%p3866_p8), [#allocation2], %s2204_s13 }
  0x4c   : > { %3096 = dma.done.wait (%p3867_p13), %s238_s15, 128  }
  0x4d   : > { %3098 = vsyncadd (%p3867_p13), %s238_s15, 4294967168  ;;  %s247_s11 = scalar_lea.sflag [#allocation5], %s237_s12  ;;  %s3301_s23 = scalar_lea.vmem [#allocation4], %s2204_s13 }
  0x4e   : > { %3100 = dma.done.wait (%p3867_p13), %s247_s11, 128  }
  0x4f   : > { %3102 = vsyncadd (%p3867_p13), %s247_s11, 4294967168  ;;  %p287_p7 = scmp.lt.s32.totalorder %s3117_s18, 1  ;;  %v305_v0 = vlaneseq  ;;  %v3325_v4 = vld [vmem:[%s241_s9] sm:$0xff]  ;;  %vm709_vm6 = vcmask 64512  }
  0x50   : > { %v452_v12 = vld [vmem:[%s3857_s3] sm:$0xff] }
  0x51   : > { %s3876_s18 = smov (!%p287_p7, %s3117_s18), 1  ;;  %v3311_v1 = vshrl.u32 %v305_v0, 7  ;;  %2625 = vmatprep.subr.mxu0 %v452_v12  ;;  %2947 = vmatprep.subr.mxu1 %v452_v12 }
  0x52   : > { %s2206_s10 = sshll.u32 %s3876_s18, 3  ;;  %2626 = vmatpush3.msra.mxu0 %v452_v12  ;;  %2948 = vmatpush3.msra.mxu1 %v452_v12 }
  0x53   : > { %v3315_v2 = vsub.s32 0, %v3311_v1  ;;  %v3318_v3 = vsub.s32 2, %v3311_v1  ;;  %s290_s14 = scalar_lea.vmem %s3856_s2, %s2206_s10  ;;  %v3343_v13 = vsub.s32 1, %v3311_v1  ;;  %v3346_v14 = vsub.s32 3, %v3311_v1  ;;  %s295_s25 = scalar_lea.vmem %s3858_s4, %s2206_s10 }
  0x54   : > { %v3327_v5 = vld [vmem:[%s290_s14] sm:$0xff]  ;;  %v3359_v21 = vsub.s32 4, %v3311_v1  ;;  %v3362_v22 = vsub.s32 5, %v3311_v1  ;;  %v3408_v51 = vsub.s32 6, %v3311_v1  ;;  %v3411_v52 = vsub.s32 7, %v3311_v1 }
  0x55   : > { %v310_v6 = vrot.slane %v3325_v4, %v3315_v2  ;;  %v351_v7 = vrot.slane %v3327_v5, %v3315_v2  ;;  %v318_v8 = vrot.slane %v3325_v4, %v3318_v3  ;;  %v359_v9 = vrot.slane %v3327_v5, %v3318_v3 }
  0x56   : > { %v314_v15 = vrot.slane %v3325_v4, %v3343_v13  ;;  %v322_v16 = vrot.slane %v3325_v4, %v3346_v14  ;;  %v355_v17 = vrot.slane %v3327_v5, %v3343_v13  ;;  %v363_v18 = vrot.slane %v3327_v5, %v3346_v14 }
  0x57   : > { %vm339_vm0 = vcmp.eq.s32.totalorder %v310_v6, %v3311_v1  ;;  %vm341_vm1 = vcmp.eq.s32.totalorder %v318_v8, %v3311_v1  ;;  %v326_v23 = vrot.slane %v3325_v4, %v3359_v21  ;;  %v330_v24 = vrot.slane %v3325_v4, %v3362_v22 }
  0x58   : > { %v388_v10 = vsel %vm339_vm0, %v351_v7, 0.0  ;;  %v390_v11 = vsel %vm341_vm1, %v359_v9, 0.0  ;;  %vm340_vm2 = vcmp.eq.s32.totalorder %v314_v15, %v3311_v1  ;;  %vm342_vm3 = vcmp.eq.s32.totalorder %v322_v16, %v3311_v1 }
  0x59   : > { %453 = vxpose.xlu0.b32.start.end [1/1] (short) %v388_v10, 128  ;;  %517 = vxpose.xlu1.b32.start.end [1/1] (short) %v390_v11, 128  ;;  %v389_v19 = vsel %vm340_vm2, %v355_v17, 0.0  ;;  %v391_v20 = vsel %vm342_vm3, %v363_v18, 0.0  ;;  %v367_v25 = vrot.slane %v3327_v5, %v3359_v21  ;;  %v371_v26 = vrot.slane %v3327_v5, %v3362_v22 }
  0x5a   : > { %vm343_vm4 = vcmp.eq.s32.totalorder %v326_v23, %v3311_v1  ;;  %vm344_vm5 = vcmp.eq.s32.totalorder %v330_v24, %v3311_v1  ;;  %v334_v55 = vrot.slane %v3325_v4, %v3408_v51  ;;  %v338_v56 = vrot.slane %v3325_v4, %v3411_v52 }
  0x5b   : > { %v392_v27 = vsel %vm343_vm4, %v367_v25, 0.0  ;;  %v393_v28 = vsel %vm344_vm5, %v371_v26, 0.0  ;;  %v375_v59 = vrot.slane %v3327_v5, %v3408_v51  ;;  %v379_v60 = vrot.slane %v3327_v5, %v3411_v52 }
  0x5c   : > { %vm345_vm7 = vcmp.eq.s32.totalorder %v334_v55, %v3311_v1  ;;  %vm346_vm8 = vcmp.eq.s32.totalorder %v338_v56, %v3311_v1  ;;  %vm300_vm1 = vcmask 31744  }
  0x5d   : > { %v394_v63 = vsel %vm345_vm7, %v375_v59, 0.0  ;;  %v395_v0 = vsel %vm346_vm8, %v379_v60, 0.0 }
  0x96   : > { %485 = vxpose.xlu0.b32.start.end [1/1] (short) %v389_v19, 128  ;;  %549 = vxpose.xlu1.b32.start.end [1/1] (short) %v391_v20, 128 }
  0xd3   : > { %581 = vxpose.xlu0.b32.start.end [1/1] (short) %v392_v27, 128  ;;  %613 = vxpose.xlu1.b32.start.end [1/1] (short) %v393_v28, 128 }
  0xd9   : > { %v469_v29 = vpop.trf.xlu0  ;;  %v3374_v30 = vpop.trf.xlu1 }
  0xda   : > { %2627 = vmatprep.mubr.msk.f32.mxu0 %vm709_vm6, %v469_v29 }
  0xdd   : > { %v470_v31 = vpop.trf.xlu0  ;;  %v3377_v32 = vpop.trf.xlu1 }
  0xde   : > { %2628 = vmatmul.mubr.msk.f32.vlgmr.msra.gmra.mrb[0].mxu0 %vm709_vm6, %v470_v31 }
  0xe1   : > { %v471_v33 = vpop.trf.xlu0  ;;  %v3380_v34 = vpop.trf.xlu1 }
  0xe2   : > { %2630 = vmatprep.mubr.msk.f32.mxu0 %vm709_vm6, %v471_v33 }
  0xe5   : > { %v472_v35 = vpop.trf.xlu0  ;;  %v3383_v36 = vpop.trf.xlu1 }
  0xe6   : > { %2631 = vmatmul.mubr.msk.f32.gmra.mrb[2].mxu0 %vm709_vm6, %v472_v35 }
  0xe9   : > { %v473_v37 = vpop.trf.xlu0  ;;  %v3386_v38 = vpop.trf.xlu1 }
  0xea   : > { %2633 = vmatprep.mubr.msk.f32.mxu0 %vm709_vm6, %v473_v37 }
  0xed   : > { %v474_v39 = vpop.trf.xlu0  ;;  %v3389_v40 = vpop.trf.xlu1 }
  0xee   : > { %2634 = vmatmul.mubr.msk.f32.gmra.mrb[4].mxu0 %vm709_vm6, %v474_v39 }
  0xf1   : > { %v475_v41 = vpop.trf.xlu0  ;;  %v3392_v42 = vpop.trf.xlu1 }
  0xf2   : > { %2636 = vmatprep.mubr.msk.f32.mxu0 %vm709_vm6, %v475_v41 }
  0xf5   : > { %v476_v43 = vpop.trf.xlu0  ;;  %v3395_v44 = vpop.trf.xlu1 }
  0xf6   : > { %2637 = vmatmul.mubr.msk.f32.gmra.mrb[6].mxu0 %vm709_vm6, %v476_v43 }
  0xf9   : > { %v477_v45 = vpop.trf.xlu0  ;;  %v3398_v46 = vpop.trf.xlu1 }
  0xfa   : > { %2639 = vmatprep.mubr.msk.f32.mxu0 %vm709_vm6, %v477_v45 }
  0xfd   : > { %v478_v47 = vpop.trf.xlu0  ;;  %v3401_v48 = vpop.trf.xlu1 }
  0xfe   : > { %2640 = vmatmul.mubr.msk.f32.gmra.mrb[8].mxu0 %vm709_vm6, %v478_v47 }
 0x101   : > { %v479_v49 = vpop.trf.xlu0  ;;  %v3404_v50 = vpop.trf.xlu1 }
 0x102   : > { %2642 = vmatprep.mubr.msk.f32.mxu0 %vm709_vm6, %v479_v49 }
 0x105   : > { %v480_v53 = vpop.trf.xlu0  ;;  %v3413_v54 = vpop.trf.xlu1 }
 0x106   : > { %2643 = vmatmul.mubr.msk.f32.gmra.mrb[10].mxu0 %vm709_vm6, %v480_v53 }
 0x109   : > { %v481_v57 = vpop.trf.xlu0  ;;  %v3420_v58 = vpop.trf.xlu1 }
 0x10a   : > { %2645 = vmatprep.mubr.msk.f32.mxu0 %vm709_vm6, %v481_v57 }
 0x10d   : > { %v482_v61 = vpop.trf.xlu0  ;;  %v3429_v62 = vpop.trf.xlu1 }
 0x10e   : > { %2646 = vmatmul.mubr.msk.f32.gmra.mrb[12].mxu0 %vm709_vm6, %v482_v61 }
 0x111   : > { %v483_v4 = vpop.trf.xlu0  ;;  %v3432_v6 = vpop.trf.xlu1  ;;  %645 = vxpose.xlu0.b32.start.end [1/1] (short) %v394_v63, 128  ;;  %677 = vxpose.xlu1.b32.start.end [1/1] (short) %v395_v0, 128 }
 0x112   : > { %2648 = vmatprep.mubr.msk.f32.mxu0 %vm709_vm6, %v483_v4 }
 0x115   : > { %v484_v7 = vpop.trf.xlu0  ;;  %v3435_v5 = vpop.trf.xlu1 }
 0x116   : > { %2649 = vmatmul.mubr.msk.f32.gmra.mrb[14].mxu0 %vm709_vm6, %v484_v7 }
 0x119   : > { %v501_v8 = vpop.trf.xlu0  ;;  %v3438_v9 = vpop.trf.xlu1 }
 0x11a   : > { %2651 = vmatprep.mubr.msk.f32.mxu0 %vm709_vm6, %v501_v8 }
 0x11d   : > { %v502_v10 = vpop.trf.xlu0  ;;  %v3441_v11 = vpop.trf.xlu1 }
 0x11e   : > { %2652 = vmatmul.mubr.msk.f32.gmra.mrb[16].mxu0 %vm709_vm6, %v502_v10 }
 0x121   : > { %v503_v12 = vpop.trf.xlu0  ;;  %v3444_v15 = vpop.trf.xlu1 }
 0x122   : > { %2654 = vmatprep.mubr.msk.f32.mxu0 %vm709_vm6, %v503_v12 }
 0x125   : > { %v504_v16 = vpop.trf.xlu0  ;;  %v3447_v17 = vpop.trf.xlu1 }
 0x126   : > { %2655 = vmatmul.mubr.msk.f32.gmra.mrb[18].mxu0 %vm709_vm6, %v504_v16 }
 0x129   : > { %v505_v18 = vpop.trf.xlu0  ;;  %v3450_v19 = vpop.trf.xlu1 }
 0x12a   : > { %2657 = vmatprep.mubr.msk.f32.mxu0 %vm709_vm6, %v505_v18 }
 0x12d   : > { %v506_v20 = vpop.trf.xlu0  ;;  %v3453_v23 = vpop.trf.xlu1 }
 0x12e   : > { %2658 = vmatmul.mubr.msk.f32.gmra.mrb[20].mxu0 %vm709_vm6, %v506_v20 }
 0x131   : > { %v507_v24 = vpop.trf.xlu0  ;;  %v3456_v25 = vpop.trf.xlu1 }
 0x132   : > { %2660 = vmatprep.mubr.msk.f32.mxu0 %vm709_vm6, %v507_v24 }
 0x135   : > { %v508_v26 = vpop.trf.xlu0  ;;  %v3459_v27 = vpop.trf.xlu1 }
 0x136   : > { %2661 = vmatmul.mubr.msk.f32.gmra.mrb[22].mxu0 %vm709_vm6, %v508_v26 }
 0x139   : > { %v509_v28 = vpop.trf.xlu0  ;;  %v3462_v29 = vpop.trf.xlu1 }
 0x13a   : > { %2663 = vmatprep.mubr.msk.f32.mxu0 %vm709_vm6, %v509_v28 }
 0x13d   : > { %v510_v31 = vpop.trf.xlu0  ;;  %v3465_v33 = vpop.trf.xlu1 }
 0x13e   : > { %2664 = vmatmul.mubr.msk.f32.gmra.mrb[24].mxu0 %vm709_vm6, %v510_v31 }
 0x141   : > { %v511_v35 = vpop.trf.xlu0  ;;  %v3468_v37 = vpop.trf.xlu1 }
 0x142   : > { %2666 = vmatprep.mubr.msk.f32.mxu0 %vm709_vm6, %v511_v35 }
 0x145   : > { %v512_v39 = vpop.trf.xlu0  ;;  %v3471_v41 = vpop.trf.xlu1 }
 0x146   : > { %2667 = vmatmul.mubr.msk.f32.gmra.mrb[26].mxu0 %vm709_vm6, %v512_v39 }
 0x149   : > { %v513_v43 = vpop.trf.xlu0  ;;  %v3474_v45 = vpop.trf.xlu1 }
 0x14a   : > { %2669 = vmatprep.mubr.msk.f32.mxu0 %vm709_vm6, %v513_v43 }
 0x14d   : > { %v514_v47 = vpop.trf.xlu0  ;;  %v3477_v49 = vpop.trf.xlu1 }
 0x14e   : > { %2670 = vmatmul.mubr.msk.f32.gmra.mrb[28].mxu0 %vm709_vm6, %v514_v47 }
 0x151   : > { %v515_v53 = vpop.trf.xlu0  ;;  %v3480_v55 = vpop.trf.xlu1 }
 0x152   : > { %2672 = vmatprep.mubr.msk.f32.mxu0 %vm709_vm6, %v515_v53 }
 0x155   : > { %v516_v56 = vpop.trf.xlu0  ;;  %v3483_v57 = vpop.trf.xlu1 }
 0x156   : > { %2673 = vmatmul.mubr.msk.f32.gmra.mrb[30].mxu0 %vm709_vm6, %v516_v56 }
 0x157   : > { %2675 = vmatprep.mubr.msk.f32.mxu0 %vm709_vm6, %v3374_v30 }
 0x159   : > { %v3488_v59 = vpop.trf.xlu0  ;;  %v3490_v60 = vpop.trf.xlu1 }
 0x15a   : > { %2676 = vmatmul.mubr.msk.f32.gmra.mrb[32].mxu0 %vm709_vm6, %v3377_v32 }
 0x15b   : > { %2678 = vmatprep.mubr.msk.f32.mxu0 %vm709_vm6, %v3380_v34 }
 0x15d   : > { %v3496_v61 = vpop.trf.xlu0  ;;  %v3498_v63 = vpop.trf.xlu1 }
 0x15e   : > { %2679 = vmatmul.mubr.msk.f32.gmra.mrb[34].mxu0 %vm709_vm6, %v3383_v36 }
 0x15f   : > { %2681 = vmatprep.mubr.msk.f32.mxu0 %vm709_vm6, %v3386_v38 }
 0x161   : > { %v3504_v30 = vpop.trf.xlu0  ;;  %v3506_v0 = vpop.trf.xlu1 }
 0x162   : > { %2682 = vmatmul.mubr.msk.f32.gmra.mrb[36].mxu0 %vm709_vm6, %v3389_v40 }
 0x163   : > { %2684 = vmatprep.mubr.msk.f32.mxu0 %vm709_vm6, %v3392_v42 }
 0x165   : > { %v3512_v32 = vpop.trf.xlu0  ;;  %v3514_v34 = vpop.trf.xlu1 }
 0x166   : > { %2685 = vmatmul.mubr.msk.f32.gmra.mrb[38].mxu0 %vm709_vm6, %v3395_v44 }
 0x167   : > { %2687 = vmatprep.mubr.msk.f32.mxu0 %vm709_vm6, %v3398_v46 }
 0x169   : > { %v3520_v36 = vpop.trf.xlu0  ;;  %v3522_v38 = vpop.trf.xlu1 }
 0x16a   : > { %2688 = vmatmul.mubr.msk.f32.gmra.mrb[40].mxu0 %vm709_vm6, %v3401_v48 }
 0x16b   : > { %2690 = vmatprep.mubr.msk.f32.mxu0 %vm709_vm6, %v3404_v50 }
 0x16d   : > { %v602_v40 = vpop.trf.xlu0  ;;  %v3528_v42 = vpop.trf.xlu1 }
 0x16e   : > { %2691 = vmatmul.mubr.msk.f32.gmra.mrb[42].mxu0 %vm709_vm6, %v3413_v54 }
 0x16f   : > { %2693 = vmatprep.mubr.msk.f32.mxu0 %vm709_vm6, %v3420_v58 }
 0x171   : > { %v603_v44 = vpop.trf.xlu0  ;;  %v3534_v46 = vpop.trf.xlu1 }
 0x172   : > { %2694 = vmatmul.mubr.msk.f32.gmra.mrb[44].mxu0 %vm709_vm6, %v3429_v62 }
 0x173   : > { %2696 = vmatprep.mubr.msk.f32.mxu0 %vm709_vm6, %v3432_v6 }
 0x175   : > { %v604_v48 = vpop.trf.xlu0  ;;  %v3540_v50 = vpop.trf.xlu1 }
 0x176   : > { %2697 = vmatmul.mubr.msk.f32.gmra.mrb[46].mxu0 %vm709_vm6, %v3435_v5 }
 0x177   : > { %2699 = vmatprep.mubr.msk.f32.mxu0 %vm709_vm6, %v3438_v9 }
 0x179   : > { %v605_v54 = vpop.trf.xlu0  ;;  %v3546_v58 = vpop.trf.xlu1 }
 0x17a   : > { %2700 = vmatmul.mubr.msk.f32.gmra.mrb[48].mxu0 %vm709_vm6, %v3441_v11 }
 0x17b   : > { %2702 = vmatprep.mubr.msk.f32.mxu0 %vm709_vm6, %v3444_v15 }
 0x17d   : > { %v606_v62 = vpop.trf.xlu0  ;;  %v3552_v4 = vpop.trf.xlu1 }
 0x17e   : > { %2703 = vmatmul.mubr.msk.f32.gmra.mrb[50].mxu0 %vm709_vm6, %v3447_v17 }
 0x17f   : > { %2705 = vmatprep.mubr.msk.f32.mxu0 %vm709_vm6, %v3450_v19 }
 0x181   : > { %v607_v6 = vpop.trf.xlu0  ;;  %v639_v7 = vpop.trf.xlu1 }
 0x182   : > { %2706 = vmatmul.mubr.msk.f32.gmra.mrb[52].mxu0 %vm709_vm6, %v3453_v23  ;;  %2762 = vmatprep.mubr.msk.f32.mxu1 %vm709_vm6, %v639_v7 }
 0x183   : > { %2708 = vmatprep.mubr.msk.f32.mxu0 %vm709_vm6, %v3456_v25 }
 0x185   : > { %v608_v5 = vpop.trf.xlu0  ;;  %v640_v8 = vpop.trf.xlu1 }
 0x186   : > { %2709 = vmatmul.mubr.msk.f32.gmra.mrb[54].mxu0 %vm709_vm6, %v3459_v27  ;;  %2763 = vmatmul.mubr.msk.f32.vlgmr.msra.gmra.mrb[0].mxu1 %vm709_vm6, %v640_v8 }
 0x187   : > { %2711 = vmatprep.mubr.msk.f32.mxu0 %vm709_vm6, %v3462_v29 }
 0x189   : > { %v609_v9 = vpop.trf.xlu0  ;;  %v641_v10 = vpop.trf.xlu1 }
 0x18a   : > { %2712 = vmatmul.mubr.msk.f32.gmra.mrb[56].mxu0 %vm709_vm6, %v3465_v33  ;;  %2765 = vmatprep.mubr.msk.f32.mxu1 %vm709_vm6, %v641_v10 }
 0x18b   : > { %2714 = vmatprep.mubr.msk.f32.mxu0 %vm709_vm6, %v3468_v37 }
 0x18d   : > { %v610_v11 = vpop.trf.xlu0  ;;  %v642_v12 = vpop.trf.xlu1 }
 0x18e   : > { %2715 = vmatmul.mubr.msk.f32.gmra.mrb[58].mxu0 %vm709_vm6, %v3471_v41  ;;  %2766 = vmatmul.mubr.msk.f32.gmra.mrb[2].mxu1 %vm709_vm6, %v642_v12 }
 0x18f   : > { %2717 = vmatprep.mubr.msk.f32.mxu0 %vm709_vm6, %v3474_v45 }
 0x191   : > { %v611_v15 = vpop.trf.xlu0  ;;  %v643_v16 = vpop.trf.xlu1 }
 0x192   : > { %2718 = vmatmul.mubr.msk.f32.gmra.mrb[60].mxu0 %vm709_vm6, %v3477_v49  ;;  %2768 = vmatprep.mubr.msk.f32.mxu1 %vm709_vm6, %v643_v16 }
 0x193   : > { %2720 = vmatprep.mubr.msk.f32.mxu0 %vm709_vm6, %v3480_v55 }
 0x195   : > { %v612_v17 = vpop.trf.xlu0  ;;  %v644_v18 = vpop.trf.xlu1 }
 0x196   : > { %2721 = vmatmul.mubr.msk.f32.gmra.mrb[62].mxu0 %vm709_vm6, %v3483_v57  ;;  %2769 = vmatmul.mubr.msk.f32.gmra.mrb[4].mxu1 %vm709_vm6, %v644_v18 }
 0x197   : > { %2723 = vmatprep.mubr.msk.f32.mxu0 %vm709_vm6, %v3488_v59 }
 0x199   : > { %v661_v19 = vpop.trf.xlu0  ;;  %v3588_v20 = vpop.trf.xlu1 }
 0x19a   : > { %2724 = vmatmul.mubr.msk.f32.gmra.mrb[64].mxu0 %vm709_vm6, %v3496_v61  ;;  %2771 = vmatprep.mubr.msk.f32.mxu1 %vm709_vm6, %v661_v19  ;;  %v3703_v19 = vld [vmem:[%s3301_s23] sm:$0xff] }
 0x19b   : > { %2726 = vmatprep.mubr.msk.f32.mxu0 %vm709_vm6, %v3504_v30 }
 0x19d   : > { %v662_v23 = vpop.trf.xlu0  ;;  %v3598_v24 = vpop.trf.xlu1 }
 0x19e   : > { %2727 = vmatmul.mubr.msk.f32.gmra.mrb[66].mxu0 %vm709_vm6, %v3512_v32  ;;  %2772 = vmatmul.mubr.msk.f32.gmra.mrb[6].mxu1 %vm709_vm6, %v662_v23 }
 0x19f   : > { %2729 = vmatprep.mubr.msk.f32.mxu0 %vm709_vm6, %v3520_v36 }
 0x1a1   : > { %v663_v25 = vpop.trf.xlu0  ;;  %v3605_v26 = vpop.trf.xlu1 }
 0x1a2   : > { %2730 = vmatmul.mubr.msk.f32.gmra.mrb[68].mxu0 %vm709_vm6, %v602_v40  ;;  %2774 = vmatprep.mubr.msk.f32.mxu1 %vm709_vm6, %v663_v25 }
 0x1a3   : > { %2732 = vmatprep.mubr.msk.f32.mxu0 %vm709_vm6, %v603_v44 }
 0x1a5   : > { %v664_v27 = vpop.trf.xlu0  ;;  %v3612_v29 = vpop.trf.xlu1 }
 0x1a6   : > { %2733 = vmatmul.mubr.msk.f32.gmra.mrb[70].mxu0 %vm709_vm6, %v604_v48  ;;  %2775 = vmatmul.mubr.msk.f32.gmra.mrb[8].mxu1 %vm709_vm6, %v664_v27  ;;  %v3129_v27 = vmov 1.0  }
 0x1a7   : > { %2735 = vmatprep.mubr.msk.f32.mxu0 %vm709_vm6, %v605_v54 }
 0x1a9   : > { %v665_v28 = vpop.trf.xlu0  ;;  %v3618_v33 = vpop.trf.xlu1 }
 0x1aa   : > { %2736 = vmatmul.mubr.msk.f32.gmra.mrb[72].mxu0 %vm709_vm6, %v606_v62  ;;  %2777 = vmatprep.mubr.msk.f32.mxu1 %vm709_vm6, %v665_v28 }
 0x1ab   : > { %2738 = vmatprep.mubr.msk.f32.mxu0 %vm709_vm6, %v607_v6 }
 0x1ad   : > { %v666_v31 = vpop.trf.xlu0  ;;  %v698_v45 = vpop.trf.xlu1 }
 0x1ae   : > { %2739 = vmatmul.mubr.msk.f32.gmra.mrb[74].mxu0 %vm709_vm6, %v608_v5  ;;  %2778 = vmatmul.mubr.msk.f32.gmra.mrb[10].mxu1 %vm709_vm6, %v666_v31 }
 0x1af   : > { %2741 = vmatprep.mubr.msk.f32.mxu0 %vm709_vm6, %v609_v9 }
 0x1b1   : > { %v3620_v35 = vpop.f32.mrb[0].mxu0  ;;  %v667_v37 = vpop.trf.xlu0 }
 0x1b2   : > { %v3622_v39 = vpop.f32.mrb[1].mxu0  ;;  %2742 = vmatmul.mubr.msk.f32.gmra.mrb[76].mxu0 %vm709_vm6, %v610_v11  ;;  %2780 = vmatprep.mubr.msk.f32.mxu1 %vm709_vm6, %v667_v37  ;;  %v699_v56 = vpop.trf.xlu1 }
 0x1b3   : > { %v2821_v41 = vpack.c.bf16 %v3620_v35, %v3622_v39  ;;  %2744 = vmatprep.mubr.msk.f32.mxu0 %vm709_vm6, %v611_v15 }
 0x1b5   : > { %v668_v43 = vpop.trf.xlu0 }
 0x1b6   : > { %2745 = vmatmul.mubr.msk.f32.gmra.mrb[78].mxu0 %vm709_vm6, %v612_v17  ;;  %2781 = vmatmul.mubr.msk.f32.gmra.mrb[12].mxu1 %vm709_vm6, %v668_v43 }
 0x1b7   : > { %2747 = vmatprep.mubr.msk.f32.mxu0 %vm709_vm6, %v3490_v60 }
 0x1b9   : > { %v3633_v47 = vpop.f32.mrb[2].mxu0  ;;  %v669_v49 = vpop.trf.xlu0 }
 0x1ba   : > { %v3635_v53 = vpop.f32.mrb[3].mxu0  ;;  %2748 = vmatmul.mubr.msk.f32.gmra.mrb[80].mxu0 %vm709_vm6, %v3498_v63  ;;  %2783 = vmatprep.mubr.msk.f32.mxu1 %vm709_vm6, %v669_v49  ;;  %v700_v63 = vpop.trf.xlu1 }
 0x1bb   : > { %v2825_v55 = vpack.c.bf16 %v3633_v47, %v3635_v53  ;;  %2750 = vmatprep.mubr.msk.f32.mxu0 %vm709_vm6, %v3506_v0 }
 0x1bd   : > { %v670_v57 = vpop.trf.xlu0 }
 0x1be   : > { %2751 = vmatmul.mubr.msk.f32.gmra.mrb[82].mxu0 %vm709_vm6, %v3514_v34  ;;  %2784 = vmatmul.mubr.msk.f32.gmra.mrb[14].mxu1 %vm709_vm6, %v670_v57  ;;  %v701_v32 = vpop.trf.xlu1 }
 0x1bf   : > { %2753 = vmatprep.mubr.msk.f32.mxu0 %vm709_vm6, %v3522_v38 }
 0x1c1   : > { %v3649_v59 = vpop.f32.mrb[4].mxu0  ;;  %v671_v60 = vpop.trf.xlu0 }
 0x1c2   : > { %v3651_v61 = vpop.f32.mrb[5].mxu0  ;;  %2754 = vmatmul.mubr.msk.f32.gmra.mrb[84].mxu0 %vm709_vm6, %v3528_v42  ;;  %2786 = vmatprep.mubr.msk.f32.mxu1 %vm709_vm6, %v671_v60  ;;  %v702_v44 = vpop.trf.xlu1 }
 0x1c3   : > { %v2829_v30 = vpack.c.bf16 %v3649_v59, %v3651_v61  ;;  %2756 = vmatprep.mubr.msk.f32.mxu0 %vm709_vm6, %v3534_v46 }
 0x1c5   : > { %v672_v0 = vpop.trf.xlu0 }
 0x1c6   : > { %2757 = vmatmul.mubr.msk.f32.gmra.mrb[86].mxu0 %vm709_vm6, %v3540_v50  ;;  %2787 = vmatmul.mubr.msk.f32.gmra.mrb[16].mxu1 %vm709_vm6, %v672_v0  ;;  %v703_v62 = vpop.trf.xlu1  ;;  %v411_v0 = vrot.slane %v3703_v19, %v3346_v14 }
 0x1c7   : > { %2759 = vmatprep.mubr.msk.f32.mxu0 %vm709_vm6, %v3546_v58 }
 0x1c8   : > { %vm431_vm11 = vcmp.eq.s32.totalorder %v411_v0, %v3311_v1  ;;  %v407_v0 = vrot.slane %v3703_v19, %v3318_v3 }
 0x1c9   : > { %v3665_v34 = vpop.f32.mrb[6].mxu0  ;;  %v673_v36 = vpop.trf.xlu0 }
 0x1ca   : > { %v3667_v38 = vpop.f32.mrb[7].mxu0  ;;  %2760 = vmatmul.mubr.msk.f32.gmra.mrb[88].mxu0 %vm709_vm6, %v3552_v4  ;;  %2789 = vmatprep.mubr.msk.f32.mxu1 %vm709_vm6, %v673_v36  ;;  %v704_v5 = vpop.trf.xlu1  ;;  %vm430_vm12 = vcmp.eq.s32.totalorder %v407_v0, %v3311_v1 }
 0x1cb   : > { %v2833_v40 = vpack.c.bf16 %v3665_v34, %v3667_v38 }
 0x1cd   : > { %v674_v42 = vpop.trf.xlu0 }
 0x1ce   : > { %2790 = vmatmul.mubr.msk.f32.gmra.mrb[18].mxu1 %vm709_vm6, %v674_v42  ;;  %v705_v9 = vpop.trf.xlu1 }
 0x1d1   : > { %v3675_v46 = vpop.f32.mrb[8].mxu0  ;;  %v675_v48 = vpop.trf.xlu0 }
 0x1d2   : > { %v3677_v50 = vpop.f32.mrb[9].mxu0  ;;  %2792 = vmatprep.mubr.msk.f32.mxu1 %vm709_vm6, %v675_v48  ;;  %v706_v12 = vpop.trf.xlu1 }
 0x1d3   : > { %v2837_v54 = vpack.c.bf16 %v3675_v46, %v3677_v50 }
 0x1d5   : > { %v676_v58 = vpop.trf.xlu0 }
 0x1d6   : > { %2793 = vmatmul.mubr.msk.f32.gmra.mrb[20].mxu1 %vm709_vm6, %v676_v58  ;;  %v707_v18 = vpop.trf.xlu1 }
 0x1d7   : > { %2795 = vmatprep.mubr.msk.f32.mxu1 %vm709_vm6, %v3588_v20  ;;  %v403_v20 = vrot.slane %v3703_v19, %v3343_v13 }
 0x1d9   : > { %v3685_v4 = vpop.f32.mrb[10].mxu0  ;;  %vm429_vm9 = vcmp.eq.s32.totalorder %v403_v20, %v3311_v1 }
 0x1da   : > { %v1210_v6 = vpop.f32.mrb[11].mxu0  ;;  %2796 = vmatmul.mubr.msk.f32.gmra.mrb[22].mxu1 %vm709_vm6, %v3598_v24 }
 0x1db   : > { %v2841_v7 = vpack.c.bf16 %v3685_v4, %v1210_v6  ;;  %2798 = vmatprep.mubr.msk.f32.mxu1 %vm709_vm6, %v3605_v26  ;;  %v708_v26 = vpop.trf.xlu1 }
 0x1de   : > { %2799 = vmatmul.mubr.msk.f32.gmra.mrb[24].mxu1 %vm709_vm6, %v3612_v29 }
 0x1df   : > { %2801 = vmatprep.mubr.msk.f32.mxu1 %vm709_vm6, %v3618_v33 }
 0x1e1   : > { %v2647_v8 = vpop.f32.mrb[12].mxu0 }
 0x1e2   : > { %v1220_v10 = vpop.f32.mrb[13].mxu0  ;;  %2802 = vmatmul.mubr.msk.f32.gmra.mrb[26].mxu1 %vm709_vm6, %v698_v45 }
 0x1e3   : > { %v2845_v11 = vpack.c.bf16 %v2647_v8, %v1220_v10  ;;  %2804 = vmatprep.mubr.msk.f32.mxu1 %vm709_vm6, %v699_v56 }
 0x1e6   : > { %2805 = vmatmul.mubr.msk.f32.gmra.mrb[28].mxu1 %vm709_vm6, %v700_v63  ;;  %v399_v63 = vrot.slane %v3703_v19, %v3315_v2 }
 0x1e7   : > { %2807 = vmatprep.mubr.msk.f32.mxu1 %vm709_vm6, %v701_v32 }
 0x1e8   : > { %vm428_vm10 = vcmp.eq.s32.totalorder %v399_v63, %v3311_v1 }
 0x1e9   : > { %v2650_v15 = vpop.f32.mrb[14].mxu0 }
 0x1ea   : > { %v1230_v16 = vpop.f32.mrb[15].mxu0  ;;  %2808 = vmatmul.mubr.msk.f32.gmra.mrb[30].mxu1 %vm709_vm6, %v702_v44 }
 0x1eb   : > { %v2849_v17 = vpack.c.bf16 %v2650_v15, %v1230_v16  ;;  %2810 = vmatprep.mubr.msk.f32.mxu1 %vm709_vm6, %v703_v62 }
 0x1ee   : > { %2811 = vmatmul.mubr.msk.f32.gmra.mrb[32].mxu1 %vm709_vm6, %v704_v5 }
 0x1ef   : > { %2813 = vmatprep.mubr.msk.f32.mxu1 %vm709_vm6, %v705_v9 }
 0x1f1   : > { %v2653_v23 = vpop.f32.mrb[16].mxu0 }
 0x1f2   : > { %v1240_v24 = vpop.f32.mrb[17].mxu0  ;;  %2814 = vmatmul.mubr.msk.f32.gmra.mrb[34].mxu1 %vm709_vm6, %v706_v12 }
 0x1f3   : > { %v2819_v25 = vpack.c.bf16 %v2653_v23, %v1240_v24  ;;  %2816 = vmatprep.mubr.msk.f32.mxu1 %vm709_vm6, %v707_v18 }
 0x1f5   : > { %2820 = vmatprep.subr.bf16.mxu1 %v2819_v25 }
 0x1f6   : > { %2817 = vmatmul.mubr.msk.f32.gmra.mrb[36].mxu1 %vm709_vm6, %v708_v26 }
 0x1f7   : > { %2822 = vmatpush3.bf16.msra.mxu1 %v2821_v41  ;;  %2344 = vmatprep.mubr.msk.f32.mxu1 %vm429_vm9, %v3129_v27 }
 0x1f9   : > { %v2656_v13 = vpop.f32.mrb[18].mxu0 }
 0x1fa   : > { %v1250_v28 = vpop.f32.mrb[19].mxu0 }
 0x1fb   : > { %v2823_v29 = vpack.c.bf16 %v2656_v13, %v1250_v28 }
 0x1fd   : > { %2824 = vmatprep.subr.bf16.mxu1 %v2823_v29 }
 0x1fe   : > { %2826 = vmatpush3.bf16.msra.mxu1 %v2825_v55 }
 0x201   : > { %v2659_v31 = vpop.f32.mrb[20].mxu0 }
 0x202   : > { %v1260_v33 = vpop.f32.mrb[21].mxu0 }
 0x203   : > { %v2827_v37 = vpack.c.bf16 %v2659_v31, %v1260_v33 }
 0x205   : > { %2828 = vmatprep.subr.bf16.mxu1 %v2827_v37 }
 0x206   : > { %2830 = vmatpush3.bf16.msra.mxu1 %v2829_v30 }
 0x209   : > { %v2662_v35 = vpop.f32.mrb[22].mxu0 }
 0x20a   : > { %v1270_v39 = vpop.f32.mrb[23].mxu0 }
 0x20b   : > { %v2831_v41 = vpack.c.bf16 %v2662_v35, %v1270_v39 }
 0x20d   : > { %2832 = vmatprep.subr.bf16.mxu1 %v2831_v41 }
 0x20e   : > { %2834 = vmatpush3.bf16.msra.mxu1 %v2833_v40 }
 0x211   : > { %v2665_v43 = vpop.f32.mrb[24].mxu0 }
 0x212   : > { %v1280_v45 = vpop.f32.mrb[25].mxu0 }
 0x213   : > { %v2835_v47 = vpack.c.bf16 %v2665_v43, %v1280_v45 }
 0x215   : > { %2836 = vmatprep.subr.bf16.mxu1 %v2835_v47 }
 0x216   : > { %2838 = vmatpush3.bf16.msra.mxu1 %v2837_v54 }
 0x219   : > { %v2668_v49 = vpop.f32.mrb[26].mxu0 }
 0x21a   : > { %v1290_v53 = vpop.f32.mrb[27].mxu0 }
 0x21b   : > { %v2839_v55 = vpack.c.bf16 %v2668_v49, %v1290_v53 }
 0x21d   : > { %2840 = vmatprep.subr.bf16.mxu1 %v2839_v55 }
 0x21e   : > { %2842 = vmatpush3.bf16.msra.mxu1 %v2841_v7 }
 0x221   : > { %v2671_v56 = vpop.f32.mrb[28].mxu0 }
 0x222   : > { %v1300_v57 = vpop.f32.mrb[29].mxu0 }
 0x223   : > { %v2843_v59 = vpack.c.bf16 %v2671_v56, %v1300_v57 }
 0x225   : > { %2844 = vmatprep.subr.bf16.mxu1 %v2843_v59 }
 0x226   : > { %2846 = vmatpush3.bf16.msra.mxu1 %v2845_v11 }
 0x229   : > { %v2674_v60 = vpop.f32.mrb[30].mxu0 }
 0x22a   : > { %v1310_v61 = vpop.f32.mrb[31].mxu0 }
 0x22b   : > { %v2847_v30 = vpack.c.bf16 %v2674_v60, %v1310_v61 }
 0x22d   : > { %v2677_v32 = vpop.f32.mrb[32].mxu0  ;;  %2848 = vmatprep.subr.bf16.mxu1 %v2847_v30 }
 0x22e   : > { %v1320_v34 = vpop.f32.mrb[33].mxu0  ;;  %2850 = vmatpush3.bf16.msra.mxu1 %v2849_v17 }
 0x22f   : > { %v2853_v36 = vpack.c.bf16 %v2677_v32, %v1320_v34 }
 0x231   : > { %v2680_v38 = vpop.f32.mrb[34].mxu0  ;;  %2345 = vmatmul.mubr.msk.f32.vlgmr.msra.gmra.mrb[38].mxu1 %vm428_vm10, %v3129_v27 }
 0x232   : > { %v1330_v40 = vpop.f32.mrb[35].mxu0  ;;  %2346 = vmatprep.mubr.msk.f32.mxu1 %vm431_vm11, %v3129_v27 }
 0x233   : > { %v2857_v2 = vpack.c.bf16 %v2680_v38, %v1330_v40 }
 0x235   : > { %v2683_v42 = vpop.f32.mrb[36].mxu0 }
 0x236   : > { %v1340_v44 = vpop.f32.mrb[37].mxu0 }
 0x237   : > { %v2861_v46 = vpack.c.bf16 %v2683_v42, %v1340_v44 }
 0x239   : > { %v2686_v14 = vpop.f32.mrb[38].mxu0 }
 0x23a   : > { %v1350_v48 = vpop.f32.mrb[39].mxu0 }
 0x23b   : > { %v2865_v50 = vpack.c.bf16 %v2686_v14, %v1350_v48 }
 0x23d   : > { %v2689_v54 = vpop.f32.mrb[40].mxu0 }
 0x23e   : > { %v1360_v58 = vpop.f32.mrb[41].mxu0 }
 0x23f   : > { %v2869_v62 = vpack.c.bf16 %v2689_v54, %v1360_v58 }
 0x241   : > { %v2692_v4 = vpop.f32.mrb[42].mxu0 }
 0x242   : > { %v1370_v6 = vpop.f32.mrb[43].mxu0 }
 0x243   : > { %v2873_v7 = vpack.c.bf16 %v2692_v4, %v1370_v6 }
 0x245   : > { %v2695_v5 = vpop.f32.mrb[44].mxu0 }
 0x246   : > { %v1380_v8 = vpop.f32.mrb[45].mxu0 }
 0x247   : > { %v2877_v9 = vpack.c.bf16 %v2695_v5, %v1380_v8 }
 0x249   : > { %v2698_v10 = vpop.f32.mrb[46].mxu0 }
 0x24a   : > { %v1390_v11 = vpop.f32.mrb[47].mxu0 }
 0x24b   : > { %v2881_v12 = vpack.c.bf16 %v2698_v10, %v1390_v11 }
 0x24d   : > { %v2701_v15 = vpop.f32.mrb[48].mxu0 }
 0x24e   : > { %v1400_v16 = vpop.f32.mrb[49].mxu0 }
 0x24f   : > { %v2851_v17 = vpack.c.bf16 %v2701_v15, %v1400_v16 }
 0x251   : > { %v2704_v18 = vpop.f32.mrb[50].mxu0  ;;  %2852 = vmatprep.subr.bf16.mxu1 %v2851_v17 }
 0x252   : > { %v1410_v20 = vpop.f32.mrb[51].mxu0  ;;  %2854 = vmatpush3.bf16.msra.mxu1 %v2853_v36  ;;  %v419_v36 = vrot.slane %v3703_v19, %v3362_v22 }
 0x253   : > { %v2855_v23 = vpack.c.bf16 %v2704_v18, %v1410_v20 }
 0x254   : > { %vm433_vm13 = vcmp.eq.s32.totalorder %v419_v36, %v3311_v1 }
 0x255   : > { %v2707_v24 = vpop.f32.mrb[52].mxu0  ;;  %2856 = vmatprep.subr.bf16.mxu1 %v2855_v23 }
 0x256   : > { %v1420_v25 = vpop.f32.mrb[53].mxu0  ;;  %2858 = vmatpush3.bf16.msra.mxu1 %v2857_v2 }
 0x257   : > { %v2859_v26 = vpack.c.bf16 %v2707_v24, %v1420_v25 }
 0x259   : > { %v2710_v13 = vpop.f32.mrb[54].mxu0  ;;  %2860 = vmatprep.subr.bf16.mxu1 %v2859_v26  ;;  %v3734_v28 = vpop.f32.mrb[0].mxu1 }
 0x25a   : > { %v1430_v29 = vpop.f32.mrb[55].mxu0  ;;  %2862 = vmatpush3.bf16.msra.mxu1 %v2861_v46  ;;  %v3736_v31 = vpop.f32.mrb[1].mxu1 }
 0x25b   : > { %v2863_v33 = vpack.c.bf16 %v2710_v13, %v1430_v29  ;;  %v2903_v37 = vpack.c.bf16 %v3734_v28, %v3736_v31  ;;  %v427_v28 = vrot.slane %v3703_v19, %v3411_v52 }
 0x25d   : > { %v2713_v35 = vpop.f32.mrb[56].mxu0  ;;  %2864 = vmatprep.subr.bf16.mxu1 %v2863_v33  ;;  %vm435_vm15 = vcmp.eq.s32.totalorder %v427_v28, %v3311_v1 }
 0x25e   : > { %v1440_v39 = vpop.f32.mrb[57].mxu0  ;;  %2866 = vmatpush3.bf16.msra.mxu1 %v2865_v50 }
 0x25f   : > { %v2867_v41 = vpack.c.bf16 %v2713_v35, %v1440_v39 }
 0x261   : > { %v2716_v43 = vpop.f32.mrb[58].mxu0  ;;  %2868 = vmatprep.subr.bf16.mxu1 %v2867_v41  ;;  %v3740_v45 = vpop.f32.mrb[2].mxu1 }
 0x262   : > { %v1450_v47 = vpop.f32.mrb[59].mxu0  ;;  %2870 = vmatpush3.bf16.msra.mxu1 %v2869_v62  ;;  %v3742_v49 = vpop.f32.mrb[3].mxu1 }
 0x263   : > { %v2871_v53 = vpack.c.bf16 %v2716_v43, %v1450_v47  ;;  %v2907_v55 = vpack.c.bf16 %v3740_v45, %v3742_v49 }
 0x265   : > { %v2719_v56 = vpop.f32.mrb[60].mxu0  ;;  %2872 = vmatprep.subr.bf16.mxu1 %v2871_v53 }
 0x266   : > { %v1460_v57 = vpop.f32.mrb[61].mxu0  ;;  %2874 = vmatpush3.bf16.msra.mxu1 %v2873_v7 }
 0x267   : > { %v2875_v59 = vpack.c.bf16 %v2719_v56, %v1460_v57 }
 0x269   : > { %v2722_v60 = vpop.f32.mrb[62].mxu0  ;;  %2876 = vmatprep.subr.bf16.mxu1 %v2875_v59  ;;  %v3746_v61 = vpop.f32.mrb[4].mxu1 }
 0x26a   : > { %v1470_v63 = vpop.f32.mrb[63].mxu0  ;;  %2878 = vmatpush3.bf16.msra.mxu1 %v2877_v9  ;;  %v3748_v30 = vpop.f32.mrb[5].mxu1 }
 0x26b   : > { %v2879_v32 = vpack.c.bf16 %v2722_v60, %v1470_v63  ;;  %v2911_v34 = vpack.c.bf16 %v3746_v61, %v3748_v30 }
 0x26d   : > { %v2725_v38 = vpop.f32.mrb[64].mxu0  ;;  %2880 = vmatprep.subr.bf16.mxu1 %v2879_v32 }
 0x26e   : > { %v1480_v40 = vpop.f32.mrb[65].mxu0  ;;  %2882 = vmatpush3.bf16.msra.mxu1 %v2881_v12 }
 0x26f   : > { %v2885_v2 = vpack.c.bf16 %v2725_v38, %v1480_v40 }
 0x271   : > { %v2728_v42 = vpop.f32.mrb[66].mxu0  ;;  %v3758_v44 = vpop.f32.mrb[6].mxu1  ;;  %2347 = vmatmul.mubr.msk.f32.vlgmr.msra.gmra.mrb[40].mxu1 %vm430_vm12, %v3129_v27 }
 0x272   : > { %v1490_v3 = vpop.f32.mrb[67].mxu0  ;;  %v3761_v46 = vpop.f32.mrb[7].mxu1  ;;  %2348 = vmatprep.mubr.msk.f32.mxu1 %vm433_vm13, %v3129_v27 }
 0x273   : > { %v2889_v22 = vpack.c.bf16 %v2728_v42, %v1490_v3  ;;  %v2917_v14 = vpack.c.bf16 %v3758_v44, %v3761_v46 }
 0x275   : > { %v2731_v48 = vpop.f32.mrb[68].mxu0 }
 0x276   : > { %v1500_v50 = vpop.f32.mrb[69].mxu0 }
 0x277   : > { %v2893_v54 = vpack.c.bf16 %v2731_v48, %v1500_v50 }
 0x279   : > { %v2734_v58 = vpop.f32.mrb[70].mxu0  ;;  %v3766_v62 = vpop.f32.mrb[8].mxu1 }
 0x27a   : > { %v1510_v4 = vpop.f32.mrb[71].mxu0  ;;  %v3768_v6 = vpop.f32.mrb[9].mxu1 }
 0x27b   : > { %v2897_v7 = vpack.c.bf16 %v2734_v58, %v1510_v4  ;;  %v2921_v5 = vpack.c.bf16 %v3766_v62, %v3768_v6 }
 0x27d   : > { %v2737_v8 = vpop.f32.mrb[72].mxu0 }
 0x27e   : > { %v1520_v9 = vpop.f32.mrb[73].mxu0 }
 0x27f   : > { %v2901_v10 = vpack.c.bf16 %v2737_v8, %v1520_v9 }
 0x281   : > { %v2740_v11 = vpop.f32.mrb[74].mxu0  ;;  %v3772_v12 = vpop.f32.mrb[10].mxu1 }
 0x282   : > { %v1530_v15 = vpop.f32.mrb[75].mxu0  ;;  %v3774_v16 = vpop.f32.mrb[11].mxu1 }
 0x283   : > { %v2905_v17 = vpack.c.bf16 %v2740_v11, %v1530_v15  ;;  %v2925_v18 = vpack.c.bf16 %v3772_v12, %v3774_v16 }
 0x285   : > { %v2743_v20 = vpop.f32.mrb[76].mxu0 }
 0x286   : > { %v1540_v23 = vpop.f32.mrb[77].mxu0 }
 0x287   : > { %v2909_v24 = vpack.c.bf16 %v2743_v20, %v1540_v23  ;;  %v423_v23 = vrot.slane %v3703_v19, %v3408_v51 }
 0x289   : > { %v2746_v25 = vpop.f32.mrb[78].mxu0  ;;  %v3778_v26 = vpop.f32.mrb[12].mxu1  ;;  %vm434_vm0 = vcmp.eq.s32.totalorder %v423_v23, %v3311_v1 }
 0x28a   : > { %v1550_v13 = vpop.f32.mrb[79].mxu0  ;;  %v3780_v29 = vpop.f32.mrb[13].mxu1 }
 0x28b   : > { %v2913_v33 = vpack.c.bf16 %v2746_v25, %v1550_v13  ;;  %v2929_v35 = vpack.c.bf16 %v3778_v26, %v3780_v29  ;;  %v3130_v29 = vmov 0.0  }
 0x28c   : > { %301 = vst.msk [vmem:[%s295_s25] sm:$0xff] %vm300_vm1, %v3130_v29 }
 0x28d   : > { %v2749_v39 = vpop.f32.mrb[80].mxu0 }
 0x28e   : > { %v1560_v41 = vpop.f32.mrb[81].mxu0 }
 0x28f   : > { %v2883_v43 = vpack.c.bf16 %v2749_v39, %v1560_v41 }
 0x291   : > { %v2752_v47 = vpop.f32.mrb[82].mxu0  ;;  %v3784_v53 = vpop.f32.mrb[14].mxu1  ;;  %2884 = vmatprep.subr.bf16.mxu1 %v2883_v43 }
 0x292   : > { %v1570_v56 = vpop.f32.mrb[83].mxu0  ;;  %v3786_v57 = vpop.f32.mrb[15].mxu1  ;;  %2886 = vmatpush3.bf16.msra.mxu1 %v2885_v2 }
 0x293   : > { %v2887_v59 = vpack.c.bf16 %v2752_v47, %v1570_v56  ;;  %v2933_v60 = vpack.c.bf16 %v3784_v53, %v3786_v57  ;;  %v2079_v56 = vld [vmem:[%s295_s25] sm:$0xff] }
 0x295   : > { %v2755_v63 = vpop.f32.mrb[84].mxu0  ;;  %2888 = vmatprep.subr.bf16.mxu1 %v2887_v59 }
 0x296   : > { %v1580_v0 = vpop.f32.mrb[85].mxu0  ;;  %2890 = vmatpush3.bf16.msra.mxu1 %v2889_v22 }
 0x297   : > { %v2891_v32 = vpack.c.bf16 %v2755_v63, %v1580_v0 }
 0x299   : > { %v2758_v36 = vpop.f32.mrb[86].mxu0  ;;  %v3790_v38 = vpop.f32.mrb[16].mxu1  ;;  %2892 = vmatprep.subr.bf16.mxu1 %v2891_v32 }
 0x29a   : > { %v1590_v40 = vpop.f32.mrb[87].mxu0  ;;  %v1690_v42 = vpop.f32.mrb[17].mxu1  ;;  %2894 = vmatpush3.bf16.msra.mxu1 %v2893_v54 }
 0x29b   : > { %v2895_v3 = vpack.c.bf16 %v2758_v36, %v1590_v40  ;;  %v2937_v48 = vpack.c.bf16 %v3790_v38, %v1690_v42 }
 0x29d   : > { %v2761_v2 = vpop.f32.mrb[88].mxu0  ;;  %2896 = vmatprep.subr.bf16.mxu1 %v2895_v3 }
 0x29e   : > { %v1600_v50 = vpop.f32.mrb[89].mxu0  ;;  %2898 = vmatpush3.bf16.msra.mxu1 %v2897_v7  ;;  %v415_v7 = vrot.slane %v3703_v19, %v3359_v21 }
 0x29f   : > { %v2899_v58 = vpack.c.bf16 %v2761_v2, %v1600_v50 }
 0x2a0   : > { %vm432_vm14 = vcmp.eq.s32.totalorder %v415_v7, %v3311_v1 }
 0x2a1   : > { %v2791_v4 = vpop.f32.mrb[18].mxu1  ;;  %2900 = vmatprep.subr.bf16.mxu1 %v2899_v58 }
 0x2a2   : > { %v1700_v8 = vpop.f32.mrb[19].mxu1  ;;  %2902 = vmatpush3.bf16.msra.mxu1 %v2901_v10 }
 0x2a3   : > { %v2941_v22 = vpack.c.bf16 %v2791_v4, %v1700_v8  ;;  %2904 = vmatprep.subr.bf16.mxu1 %v2903_v37 }
 0x2a6   : > { %2906 = vmatpush3.bf16.msra.mxu1 %v2905_v17 }
 0x2a7   : > { %2908 = vmatprep.subr.bf16.mxu1 %v2907_v55 }
 0x2a9   : > { %v2794_v54 = vpop.f32.mrb[20].mxu1 }
 0x2aa   : > { %v1710_v9 = vpop.f32.mrb[21].mxu1  ;;  %2910 = vmatpush3.bf16.msra.mxu1 %v2909_v24 }
 0x2ab   : > { %v2945_v11 = vpack.c.bf16 %v2794_v54, %v1710_v9  ;;  %2912 = vmatprep.subr.bf16.mxu1 %v2911_v34 }
 0x2ad   : > { %v2797_v31 = vpop.f32.mrb[22].mxu1 }
 0x2ae   : > { %v1720_v37 = vpop.f32.mrb[23].mxu1  ;;  %2914 = vmatpush3.bf16.msra.mxu1 %v2913_v33 }
 0x2af   : > { %v2915_v45 = vpack.c.bf16 %v2797_v31, %v1720_v37 }
 0x2b1   : > { %v2800_v49 = vpop.f32.mrb[24].mxu1  ;;  %2349 = vmatmul.mubr.msk.f32.vlgmr.msra.gmra.mrb[42].mxu1 %vm432_vm14, %v3129_v27  ;;  %2916 = vmatprep.subr.bf16.mxu1 %v2915_v45 }
 0x2b2   : > { %v1730_v21 = vpop.f32.mrb[25].mxu1  ;;  %2918 = vmatpush3.bf16.msra.mxu1 %v2917_v14  ;;  %2350 = vmatprep.mubr.msk.f32.mxu1 %vm435_vm15, %v3129_v27 }
 0x2b3   : > { %v2919_v52 = vpack.c.bf16 %v2800_v49, %v1730_v21 }
 0x2b5   : > { %v2803_v55 = vpop.f32.mrb[26].mxu1  ;;  %2920 = vmatprep.subr.bf16.mxu1 %v2919_v52 }
 0x2b6   : > { %v1740_v61 = vpop.f32.mrb[27].mxu1  ;;  %2922 = vmatpush3.bf16.msra.mxu1 %v2921_v5 }
 0x2b7   : > { %v2923_v30 = vpack.c.bf16 %v2803_v55, %v1740_v61 }
 0x2b9   : > { %v2806_v34 = vpop.f32.mrb[28].mxu1  ;;  %2924 = vmatprep.subr.bf16.mxu1 %v2923_v30 }
 0x2ba   : > { %v1750_v10 = vpop.f32.mrb[29].mxu1  ;;  %2926 = vmatpush3.bf16.msra.mxu1 %v2925_v18 }
 0x2bb   : > { %v2927_v44 = vpack.c.bf16 %v2806_v34, %v1750_v10 }
 0x2bd   : > { %v2809_v46 = vpop.f32.mrb[30].mxu1  ;;  %2928 = vmatprep.subr.bf16.mxu1 %v2927_v44 }
 0x2be   : > { %v1760_v14 = vpop.f32.mrb[31].mxu1  ;;  %2930 = vmatpush3.bf16.msra.mxu1 %v2929_v35 }
 0x2bf   : > { %v2931_v15 = vpack.c.bf16 %v2809_v46, %v1760_v14 }
 0x2c1   : > { %v2812_v17 = vpop.f32.mrb[32].mxu1  ;;  %2932 = vmatprep.subr.bf16.mxu1 %v2931_v15 }
 0x2c2   : > { %v1770_v62 = vpop.f32.mrb[33].mxu1  ;;  %2934 = vmatpush3.bf16.msra.mxu1 %v2933_v60 }
 0x2c3   : > { %v2935_v6 = vpack.c.bf16 %v2812_v17, %v1770_v62 }
 0x2c5   : > { %v2815_v5 = vpop.f32.mrb[34].mxu1  ;;  %2936 = vmatprep.subr.bf16.mxu1 %v2935_v6 }
 0x2c6   : > { %v1780_v12 = vpop.f32.mrb[35].mxu1  ;;  %2938 = vmatpush3.bf16.msra.mxu1 %v2937_v48 }
 0x2c7   : > { %v2939_v16 = vpack.c.bf16 %v2815_v5, %v1780_v12 }
 0x2c9   : > { %v2818_v18 = vpop.f32.mrb[36].mxu1  ;;  %2940 = vmatprep.subr.bf16.mxu1 %v2939_v16 }
 0x2ca   : > { %v1790_v20 = vpop.f32.mrb[37].mxu1  ;;  %2942 = vmatpush3.bf16.msra.mxu1 %v2941_v22 }
 0x2cb   : > { %v2943_v24 = vpack.c.bf16 %v2818_v18, %v1790_v20 }
 0x2cd   : > { %2944 = vmatprep.subr.bf16.mxu1 %v2943_v24 }
 0x2ce   : > { %2946 = vmatpush3.bf16.msra.mxu1 %v2945_v11 }
 0x2d1   : > { %2351 = vmatmul.mubr.msk.f32.vlgmr.msra.gmra.mrb[44].mxu1 %vm434_vm0, %v3129_v27 }
 0x304   : > { %v2517_v25 = vpop.f32.mrb[38].mxu1 }
 0x305   : > { %v2518_v26 = vpop.f32.mrb[39].mxu1 }
 0x306   : > { %v2519_v13 = vadd.f32 %v2518_v26, %v2517_v25 }
 0x344   : > { %v2552_v51 = vpop.f32.mrb[40].mxu1 }
 0x345   : > { %v2553_v19 = vpop.f32.mrb[41].mxu1 }
 0x346   : > { %v2554_v33 = vadd.f32 %v2553_v19, %v2552_v51 }
 0x348   : > { %v1936_v35 = vadd.f32 %v2554_v33, %v2519_v13 }
 0x384   : > { %v2587_v39 = vpop.f32.mrb[42].mxu1 }
 0x385   : > { %v2588_v1 = vpop.f32.mrb[43].mxu1 }
 0x386   : > { %v2589_v41 = vadd.f32 %v2588_v1, %v2587_v39 }
 0x388   : > { %v2006_v27 = vadd.f32 %v2589_v41, %v1936_v35 }
 0x3a4   : > { %v2622_v43 = vpop.f32.mrb[44].mxu1 }
 0x3a5   : > { %v2623_v47 = vpop.f32.mrb[45].mxu1 }
 0x3a6   : > { %v2624_v53 = vadd.f32 %v2623_v47, %v2622_v43 }
 0x3a8   : > { %v2076_v57 = vadd.f32 %v2624_v53, %v2006_v27 }
 0x3aa   : > { %v2080_v59 = vadd.f32 %v2079_v56, %v2076_v57 }
 0x3ac   : > { %2082 = vst.msk [vmem:[%s295_s25] sm:$0xff] %vm300_vm1, %v2080_v59 }
 0x3ad PF: > { %s20_s20 = sadd.s32 1, %s3125_s20   ;;  %s3868_s15 = smov %s3109_s16 }
 0x3ae   : > { %p17_p9 = scmp.ge.s32.totalorder %s20_s20, 4   ;;  %s3869_s16 = smov %s3113_s17 }
 0x3af   : > { %s3870_s17 = smov %s3205_s27  ;;  %s3871_s18 = smov %s3121_s19 }
 0x3b0   : > { %s3872_s19 = smov %s3874_s22  ;;  %19 = sbr.rel (!%p17_p9) target bundleno = 6 (0x6), region = 96 }
 0x3b7   :  { %2102 = vsyncpa [#allocation3], 1 }
 0x3b8   :  { %2104 = vsyncpa [#allocation3 + $0x1], 1 }
 0x3b9   :  { %2105 = vsyncpa [#allocation5], 1 }
 0x3ba   :  { %2107 = vsyncpa [#allocation5 + $0x1], 1 }

</bundles_post_ra>
